<compile_context>
chip_gen: v6e
topology: v6e:2x2x1
jax: 0.10.0
libtpu: 0.0.40
codegen_flags: <defaults>
</compile_context>

<pallas_src>
import jax
import jax.numpy as jnp
from jax.experimental import pallas as pl
from jax.experimental.pallas import tpu as pltpu


# ---------------------------------------------------------------------------
# Pallas kernel: one (Cout, TM) lane-tile of  Y_b = W @ X_b + bias
# ---------------------------------------------------------------------------
def _pointwise_conv_kernel(w_ref, b_ref, x_ref, o_ref):
    # w_ref: (Cout, Cin)   resident weights
    # b_ref: (Cout, 1)     resident bias (f32)
    # x_ref: (Cin, TM)     lane-dense spatial tile of one batch image
    # o_ref: (Cout, TM)    lane-dense output tile
    y = jnp.dot(
        w_ref[...],
        x_ref[...],
        preferred_element_type=jnp.float32,
        precision=jax.lax.Precision.HIGHEST,  # exact f32 parity; free for bf16 inputs
    )
    # Bias add on the f32 accumulator, then cast once to the output dtype
    # (important on v5e which has no bf16 VPU).
    o_ref[...] = (y + b_ref[...]).astype(o_ref.dtype)


# ---------------------------------------------------------------------------
# Tile sizing: big lane tiles (0.5-2 MiB class DMAs) but VMEM-safe on v7x.
# ---------------------------------------------------------------------------
def _pick_spatial_tile(hw, cin, cout, itemsize, budget_bytes=6 << 20, max_tm=8192):
    # Double-buffered X and Y streamed tiles must fit the budget.
    per_lane = 2 * (cin + cout) * itemsize
    tm = max(128, (budget_bytes // per_lane) // 128 * 128)
    tm = min(tm, max_tm)
    hw_pad = -(-hw // 128) * 128           # round H*W up to a lane multiple
    return min(tm, hw_pad)


def outconv_forward(x_nchw, weight_oi11, bias):
    """OutConv forward: 1x1 Conv2d with bias.  x: (B, Cin, H, W) NCHW."""
    B, Cin, H, W = x_nchw.shape
    Cout = weight_oi11.shape[0]
    HW = H * W
    dtype = x_nchw.dtype

    # Free reshapes only -- no HBM transpose passes.
    x3 = x_nchw.reshape(B, Cin, HW)
    w2d = weight_oi11.reshape(Cout, Cin).astype(dtype)   # tiny
    b2d = bias.reshape(Cout, 1).astype(jnp.float32)      # tiny, kept f32
    # TODO(synk): if the surrounding model runs bf16, pass x/weights in bf16
    # (this wrapper streams whatever dtype x arrives in; accumulation is f32).

    itemsize = jnp.dtype(dtype).itemsize
    tm = _pick_spatial_tile(HW, Cin, Cout, itemsize)
    grid = (B, pl.cdiv(HW, tm))            # ragged tail handled by Pallas masking

    # VMEM: double-buffered X + Y tiles + resident weights/bias + headroom.
    vmem_bytes = (2 * (Cin + Cout) * tm * itemsize
                  + 2 * (Cout * Cin + Cout) * 4
                  + (4 << 20))
    vmem_bytes = int(min(max(vmem_bytes, 8 << 20), 32 << 20))

    cost = pl.CostEstimate(
        flops=2 * B * HW * Cin * Cout,
        transcendentals=0,
        bytes_accessed=(x3.size * itemsize + w2d.size * itemsize
                        + bias.size * 4 + B * Cout * HW * itemsize),
    )

    y3 = pl.pallas_call(
        _pointwise_conv_kernel,
        out_shape=jax.ShapeDtypeStruct((B, Cout, HW), dtype),
        grid=grid,
        in_specs=[
            pl.BlockSpec((Cout, Cin), lambda b, j: (0, 0)),     # weights, resident
            pl.BlockSpec((Cout, 1), lambda b, j: (0, 0)),       # bias, resident
            pl.BlockSpec((None, Cin, tm), lambda b, j: (b, 0, j)),   # X lane-tile
        ],
        out_specs=pl.BlockSpec((None, Cout, tm), lambda b, j: (b, 0, j)),
        compiler_params=pltpu.CompilerParams(
            dimension_semantics=("parallel", "parallel"),       # megacore on v7x
            vmem_limit_bytes=vmem_bytes,
        ),
        cost_estimate=cost,
    )(w2d, b2d, x3)

    # Free reshape back to PyTorch NCHW.
    return y3.reshape(B, Cout, H, W)


# ---------------------------------------------------------------------------
# Pure-JAX reference (for correctness check)
# ---------------------------------------------------------------------------
def ref_outconv(x_nchw, weight_oi11, bias):
    w2d = weight_oi11.reshape(weight_oi11.shape[0], weight_oi11.shape[1])
    y = jnp.einsum("bihw,oi->bohw", x_nchw, w2d,
                   precision=jax.lax.Precision.HIGHEST)
    return y + bias[None, :, None, None]


# ---------------------------------------------------------------------------
if __name__ == "__main__":
    # OutConv(in_channels=4, out_channels=4) on a (2, 4, 16, 16) input.
    B, Cin, Cout, H, W = 2, 4, 4, 16, 16
    key = jax.random.PRNGKey(0)
    kx, kw, kb = jax.random.split(key, 3)

    x = jax.random.normal(kx, (B, Cin, H, W), dtype=jnp.float32)
    # PyTorch Conv2d parameter layouts: weight (O, I, 1, 1), bias (O,)
    weight = jax.random.normal(kw, (Cout, Cin, 1, 1), dtype=jnp.float32) * 0.1
    bias = jax.random.normal(kb, (Cout,), dtype=jnp.float32) * 0.1

    out = jax.block_until_ready(outconv_forward(x, weight, bias))
    ref = jax.block_until_ready(ref_outconv(x, weight, bias))

    assert out.shape == (B, Cout, H, W) and out.dtype == jnp.float32
    assert jnp.allclose(out, ref, atol=1e-4, rtol=1e-4), "mismatch vs reference"
    print("KERNEL_OK")
</pallas_src>

<mosaic_0001>
module attributes {stable_mosaic.version = 11 : i64} {
  func.func @_pointwise_conv_kernel(%arg0: i32, %arg1: i32, %arg2: memref<4x4xf32, #tpu.memory_space<vmem>>, %arg3: memref<4x1xf32, #tpu.memory_space<vmem>>, %arg4: memref<1x4x256xf32, #tpu.memory_space<vmem>>, %arg5: memref<1x4x256xf32, #tpu.memory_space<vmem>>) attributes {dimension_semantics = [#tpu.dimension_semantics<parallel>, #tpu.dimension_semantics<parallel>], iteration_bounds = array<i64: 2, 1>, scalar_prefetch = 0 : i64, scratch_operands = 0 : i64, tpu.core_type = #tpu.core_type<tc>, window_params = [{pipeline_mode = #tpu.pipeline_mode<synchronous>, transform_indices = @transform_0, window_bounds = array<i64: 4, 4>}, {pipeline_mode = #tpu.pipeline_mode<synchronous>, transform_indices = @transform_1, window_bounds = array<i64: 4, 1>}, {transform_indices = @transform_2, window_bounds = array<i64: 1, 4, 256>}, {transform_indices = @transform_3, window_bounds = array<i64: 1, 4, 256>}]} {
    %c0 = arith.constant 0 : index
    %c0_0 = arith.constant 0 : index
    %0 = vector.load %arg2[%c0, %c0_0] : memref<4x4xf32, #tpu.memory_space<vmem>>, vector<4x4xf32>
    %c0_1 = arith.constant 0 : index
    %c0_2 = arith.constant 0 : index
    %c0_3 = arith.constant 0 : index
    %1 = vector.load %arg4[%c0_1, %c0_2, %c0_3] : memref<1x4x256xf32, #tpu.memory_space<vmem>>, vector<1x4x256xf32>
    %2 = vector.shape_cast %1 : vector<1x4x256xf32> to vector<4x256xf32>
    %cst = arith.constant dense<0.000000e+00> : vector<4x256xf32>
    %3 = tpu.matmul %0, %2, %cst {dimension_numbers = #tpu.dot_dimension_numbers<[1], [0], [0], [1], [0, 0, 1, 1], [], []>, precision = #tpu.contract_precision<fp32>} : vector<4x4xf32>, vector<4x256xf32>, vector<4x256xf32> -> vector<4x256xf32>
    %c0_4 = arith.constant 0 : index
    %c0_5 = arith.constant 0 : index
    %4 = vector.load %arg3[%c0_4, %c0_5] : memref<4x1xf32, #tpu.memory_space<vmem>>, vector<4x1xf32>
    %5 = vector.broadcast %4 : vector<4x1xf32> to vector<4x256xf32>
    %6 = arith.addf %3, %5 : vector<4x256xf32>
    %c0_6 = arith.constant 0 : index
    %c0_7 = arith.constant 0 : index
    %c0_8 = arith.constant 0 : index
    %7 = vector.load %arg5[%c0_6, %c0_7, %c0_8] : memref<1x4x256xf32, #tpu.memory_space<vmem>>, vector<1x4x256xf32>
    %8 = vector.shape_cast %7 : vector<1x4x256xf32> to vector<4x256xf32>
    %9 = vector.shape_cast %6 : vector<4x256xf32> to vector<1x4x256xf32>
    tpu.vector_store %arg5[%c0_6, %c0_7, %c0_8], %9 {strides = array<i32>} : memref<1x4x256xf32, #tpu.memory_space<vmem>>, vector<1x4x256xf32>,
    return
  }
  func.func @transform_0(%arg0: i32, %arg1: i32) -> (i32, i32) {
    %c0_i32 = arith.constant 0 : i32
    %c0_i32_0 = arith.constant 0 : i32
    %c0_i32_1 = arith.constant 0 : i32
    return %c0_i32, %c0_i32_0 : i32, i32
  }
  func.func @transform_1(%arg0: i32, %arg1: i32) -> (i32, i32) {
    %c0_i32 = arith.constant 0 : i32
    %c0_i32_0 = arith.constant 0 : i32
    %c0_i32_1 = arith.constant 0 : i32
    return %c0_i32, %c0_i32_0 : i32, i32
  }
  func.func @transform_2(%arg0: i32, %arg1: i32) -> (i32, i32, i32) {
    %c0_i32 = arith.constant 0 : i32
    %c0_i32_0 = arith.constant 0 : i32
    return %arg0, %c0_i32, %arg1 : i32, i32, i32
  }
  func.func @transform_3(%arg0: i32, %arg1: i32) -> (i32, i32, i32) {
    %c0_i32 = arith.constant 0 : i32
    %c0_i32_0 = arith.constant 0 : i32
    return %arg0, %c0_i32, %arg1 : i32, i32, i32
  }
}

</mosaic_0001>

<bundles_post_ra>
// kernel: tpu_custom_call.1
= control target key start
LH: loop header
LB: loop body
LE: loop exit
PB: predicated region body
PF: predicated region fallthrough
CT: control target
= control target key end

     0   :  { %8 = vsyncpa [#allocation3], 0  ;;  %s1158_s0 = inlined_call_operand.vmem [shape: f32[4,4], index: 0, kind: input, shape index: {}]   ;;  %s1159_s1 = inlined_call_operand.vmem [shape: f32[4,1], index: 1, kind: input, shape index: {}]   ;;  %s1160_s2 = inlined_call_operand.hbm [shape: f32[2,4,256], index: 2, kind: input, shape index: {}]   ;;  %s1161_s3 = inlined_call_operand.hbm [shape: f32[2,4,256], index: 3, kind: output, shape index: {}]  }
   0x1   :  { %10 = vsyncpa [#allocation3 + $0x1], 0 }
   0x2   :  { %11 = vsyncpa [#allocation4], 0 }
   0x3   :  { %13 = vsyncpa [#allocation4 + $0x1], 0  ;;  %s1014_s12 = smov 0   ;;  %s1016_s13 = smov 0  }
   0x4   :  { %s1018_s14 = smov 0   ;;  %s1020_s15 = smov 0  }
   0x5   :  { %s1022_s16 = smov 0   ;;  %s1024_s17 = smov 0  }
   0x6 LB: > { %s797_s18 = sadd.s32 4294967295, %s988_s17   ;;  %s798_s19 = sadd.s32 4294967294, %s988_s17   ;;  %s988_s17 = sphi %s1024_s17, %s19_s17   ;;  %s984_s16 = sphi %s1022_s16, %s1173_s16   ;;  %s980_s15 = sphi %s1020_s15, %s1172_s15   ;;  %s976_s14 = sphi %s1018_s14, %s1171_s14   ;;  %s972_s13 = sphi %s1016_s13, %s1170_s13   ;;  %s968_s12 = sphi %s1014_s12, %s1169_s12  }
   0x7   : > { %s31_s20 = sadd.s32 1, %s984_s16  ;;  %s82_s21 = sadd.s32 1, %s976_s14 }
   0x8   : > { %p33_p0 = scmp.ge.s32.totalorder %s31_s20, 2  ;;  %p89_p1 = scmp.ne.s32.totalorder %s976_s14, %s972_s13 }
   0x9   : > { %p90_p2 = scmp.eq.s32.totalorder %s988_s17, 0  ;;  %p95_p3 = scmp.ne.s32.totalorder %s972_s13, %s968_s12 }
   0xa   : > { %s1175_s20 = smov (%p33_p0, %s31_s20), 0  ;;  %p96_p5 = scmp.eq.s32.totalorder %s797_s18, 0 }
   0xb   : > { %p1055_p4 = por %p90_p2, %p89_p1  ;;  %s77_s23 = ssub.s32 %s984_s16, %s1175_s20 }
   0xc   : > { %p121_p6 = scmp.eq.s32.totalorder %s797_s18, 1  ;;  %p80_p7 = scmp.eq.s32.totalorder %s77_s23, 0 }
   0xd   : > { %p1061_p8 = por %p96_p5, %p95_p3  ;;  %p127_p10 = scmp.eq.s32.totalorder %s798_s19, 1 }
   0xe   : > { %p1065_p9 = por %p121_p6, %p89_p1  ;;  %p826_p13 = scmp.lt.s32.totalorder %s988_s17, 2 }
   0xf   : > { %s1070_s26 = scalar_select %p80_p7, %s976_s14, %s82_s21  }
  0x10   : > { %p1072_p11 = por %p127_p10, %p95_p3  ;;  %s153_s28 = sand.u32 1, %s976_s14  }
  0x11   : > { %s801_s29 = sshll.u32 %s153_s28, 3  ;;  %s812_s30 = sshll.u32 %s984_s16, 7 }
  0x12   : > { %s1165_s27 = scalar_select %p1072_p11, 1, 0 }
  0x13   : > { %s165_s6 = scalar_lea.hbm %s1160_s2, %s812_s30  ;;  %s157_s7 = scalar_lea.vmem [#allocation2], %s801_s29 }
  0x14   : > { %s167_s8 = sshll.u32 %s157_s7, 4  ;;  %p1085_p0 = pnand %p826_p13, %p1055_p4  ;;  %s168_s8 = int_to_ptr.vmem [resolvable:$true] %s167_s8 }
  0x15   : > { %p804_p1 = scmp.ge.s32.totalorder %s988_s17, 1  ;;  %p172_p2 = scmp.lt.s32.totalorder %s988_s17, 3 }
  0x16   : > { %s154_s10 = scalar_lea.sflag [#allocation3], %s153_s28  ;;  %p882_p3 = pneg %p1085_p0 }
  0x17   : > { %s893_s11 = scalar_lea.vmem %s168_s8, 128  ;;  %s990_s18 = smov [#allocation2]  }
  0x18   : > { %p894_p5 = scmp.ne.s32.totalorder %s168_s8, %s893_s11  ;;  %s898_s19 = sshll.u32 %s990_s18, 4  ;;  %s899_s19 = int_to_ptr.vmem [resolvable:$false] %s898_s19 }
  0x19   : > { %s900_s21 = scalar_lea.vmem %s899_s19, 256  ;;  %p901_p10 = scmp.lt.s32.totalorder %s168_s8, %s899_s19 }
  0x1a   : > { %p896_p6 = pnand %p894_p5, %p882_p3  ;;  %p902_p12 = scmp.lt.s32.totalorder %s900_s21, %s893_s11 }
  0x1c   : > { %p897_p7 = pneg %p896_p6  ;;  %p903_p4 = por %p902_p12, %p901_p10 }
  0x1e   : > { %p904_p13 = pnand %p903_p4, %p897_p7 }
  0x20   : > { %907 = shalt.err (!%p904_p13)
}
  0x21   : > { %821 = dma.hbm_to_vmem [thread:$0]  (!%p1085_p0), %s165_s6, 128, %s168_s8, %s154_s10  }
  0x22   : > { %p173_p11 = pnand %p804_p1, %p172_p2 }
  0x23   : > { %s1100_s22 = sand.u32 (!%p173_p11), 1, %s972_s13  }
  0x24   : > { %176 = sbr.rel (%p173_p11) target bundleno = 279 (0x117), region = 32  ;;  %s805_s23 = sshll.u32 (!%p173_p11), %s1100_s22, 3 }
  0x25   : > { %s179_s28 = scalar_lea.sflag (!%p173_p11), [#allocation3], %s1100_s22  ;;  %s182_s29 = scalar_lea.vmem (!%p173_p11), [#allocation2], %s805_s23 }
  0x29   : > { %959 = dma.done.wait (%p1061_p8), %s179_s28, 128  }
  0x2a   : > { %961 = vsyncadd (%p1061_p8), %s179_s28, 4294967168  ;;  %v991_v0 = vmov 0.0   ;;  %v992_v1 = vmov 0   ;;  %vm221_vm0 = vcmask 1043456   ;;  %vm217_vm1 = vcmask 31744   ;;  %v208_v2 = vld [vmem:[%s182_s29] sm:$0xff] }
  0x2b   : > { %292 = vmatprep.mubr.f32.mxu0 %v991_v0  ;;  %378 = vmatprep.mubr.f32.mxu1 %v991_v0  ;;  %v207_v3 = vld [vmem:[%s1158_s0] sm:$0xf]  ;;  %v216_v5 = vcombine.high %v208_v2, %v208_v2  ;;  %v222_v6 = vsel %vm221_vm0, %v208_v2, 0  ;;  %s813_s24 = sshll.u32 %s980_s15, 7  ;;  %s204_s7 = scalar_lea.vmem [#allocation5], %s805_s23 }
  0x2c   : > { %878 = vset.pattern.permute.xlu0 %v992_v1  ;;  %v209_v4 = vld [vmem:[%s1159_s1] sm:$0xf]  ;;  %v219_v7 = vsel %vm217_vm1, %v207_v3, 0  ;;  %v258_v8 = vand.u32 4294901760, %v222_v6  ;;  %s713_s8 = sshll.u32 %s204_s7, 4  ;;  %s711_s11 = scalar_lea.hbm %s1161_s3, %s813_s24  ;;  %s714_s8 = int_to_ptr.vmem [resolvable:$true] %s713_s8 }
  0x2d   : > { %212 = vperm.xlu0 %878, %v209_v4   ;;  %v293_v9 = vand.u32 4294901760, %v219_v7  ;;  %v224_v10 = vsel %vm221_vm0, %v216_v5, 0  ;;  %s697_s18 = scalar_lea.sflag [#allocation4], %s1100_s22  ;;  %s908_s19 = scalar_lea.vmem %s714_s8, 128 }
  0x2e   : > { %v256_v11 = vand.u32 4294901760, %v224_v10  ;;  %v341_v13 = vsub.f32 %v222_v6, %v258_v8  ;;  %p909_p8 = scmp.ne.s32.totalorder %s714_s8, %s908_s19  ;;  %s993_s21 = smov [#allocation5]  }
  0x2f   : > { %v294_v12 = vsub.f32 %v219_v7, %v293_v9  ;;  %s912_s15 = sshll.u32 %s993_s21, 4  ;;  %s913_s15 = int_to_ptr.vmem [resolvable:$false] %s912_s15 }
  0x30   : > { %257 = vmatprep.subr.mxu0 %v256_v11  ;;  %v335_v15 = vsub.f32 %v224_v10, %v256_v11  ;;  %v342_v16 = vand.u32 4294901760, %v341_v13  ;;  %p910_p11 = pnand %p909_p8, %p1065_p9  ;;  %s914_s23 = scalar_lea.vmem %s913_s15, 256 }
  0x31   : > { %v295_v14 = vand.u32 4294901760, %v294_v12  ;;  %259 = vmatpush1.msra.mxu0 %v258_v8  ;;  %p915_p0 = scmp.lt.s32.totalorder %s714_s8, %s913_s15  ;;  %p916_p1 = scmp.lt.s32.totalorder %s914_s23, %s908_s19 }
  0x32   : > { %v336_v18 = vand.u32 4294901760, %v335_v15  ;;  %418 = vmatprep.subr.mxu0 %v335_v15  ;;  %v343_v19 = vsub.f32 %v341_v13, %v342_v16  ;;  %p911_p12 = pneg %p910_p11 }
  0x33   : > { %v296_v17 = vsub.f32 %v294_v12, %v295_v14  ;;  %p917_p2 = por %p916_p1, %p915_p0 }
  0x34   : > { %v337_v21 = vsub.f32 %v335_v15, %v336_v18  ;;  %v344_v22 = vand.u32 4294901760, %v343_v19 }
  0x35   : > { %v297_v20 = vand.u32 4294901760, %v296_v17  ;;  %p918_p3 = pnand %p917_p2, %p911_p12 }
  0x36   : > { %v338_v23 = vand.u32 4294901760, %v337_v21 }
  0x37   : > { %298 = vmatmul.mubr.f32.vlgmr.msra.gmra.mxu0 %v297_v20 }
  0x38   : > { %421 = vmatpush1.msra.mxu0 %v341_v13  ;;  %454 = vmatprep.mubr.f32.mxu0 %v991_v0 }
  0x39   : > { %339 = vmatprep.subr.mxu1 %v338_v23  ;;  %572 = vmatprep.subr.mxu0 %v336_v18 }
  0x3a   : > { %345 = vmatpush1.msra.mxu1 %v344_v22 }
  0x3b   : > { %380 = vmatmul.mubr.f32.vlgmr.msra.gmra.mxu1 %v293_v9  ;;  %494 = vmatprep.subr.mxu1 %v256_v11 }
  0x3c   : > { %457 = vmatmul.mubr.f32.vlgmr.msra.gmra.mxu0 %v294_v12  ;;  %496 = vmatpush1.msra.mxu1 %v258_v8 }
  0x3d   : > { %529 = vmatprep.mubr.f32.mxu1 %v991_v0  ;;  %576 = vmatpush1.msra.mxu0 %v342_v16 }
  0x3e   : > { %609 = vmatprep.mubr.f32.mxu0 %v991_v0  ;;  %648 = vmatprep.subr.mxu1 %v256_v11 }
  0x3f   : > { %533 = vmatmul.mubr.f32.vlgmr.msra.gmra.mxu1 %v295_v14 }
  0x40   : > { %611 = vmatmul.mubr.f32.vlgmr.msra.gmra.mxu0 %v293_v9  ;;  %650 = vmatpush1.msra.mxu1 %v258_v8 }
  0x41   : > { %683 = vmatprep.mubr.f32.mxu1 %v991_v0 }
  0x43   : > { %685 = vmatmul.mubr.f32.vlgmr.msra.gmra.mxu1 %v293_v9 }
  0xa8   : > { %v213_v24 = vpop.permute.xlu0 %212 }
  0xf7   : > { %v299_v25 = vpop.f32.mrf.mxu0 }
  0xf8   : > { %v300_v26 = vadd.f32 %v299_v25, %v213_v24 }
  0xf9   : > { %v301_v27 = vpop.f32.mrf.mxu0 }
  0xfa   : > { %v302_v29 = vadd.f32 %v301_v27, %v213_v24 }
  0xfb   : > { %v381_v28 = vpop.f32.mrf.mxu1 }
  0xfc   : > { %v382_v30 = vadd.f32 %v381_v28, %v300_v26  ;;  %v458_v31 = vpop.f32.mrf.mxu0 }
  0xfd   : > { %v383_v32 = vpop.f32.mrf.mxu1 }
  0xfe   : > { %v459_v33 = vadd.f32 %v458_v31, %v382_v30  ;;  %v384_v34 = vadd.f32 %v383_v32, %v302_v29  ;;  %v460_v35 = vpop.f32.mrf.mxu0 }
  0xff   : > { %v534_v36 = vpop.f32.mrf.mxu1 }
 0x100   : > { %v461_v37 = vadd.f32 %v460_v35, %v384_v34  ;;  %v535_v38 = vadd.f32 %v534_v36, %v459_v33  ;;  %v612_v39 = vpop.f32.mrf.mxu0 }
 0x101   : > { %v536_v40 = vpop.f32.mrf.mxu1 }
 0x102   : > { %v613_v41 = vadd.f32 %v612_v39, %v535_v38  ;;  %v537_v42 = vadd.f32 %v536_v40, %v461_v37  ;;  %v614_v43 = vpop.f32.mrf.mxu0 }
 0x103   : > { %v686_v44 = vpop.f32.mrf.mxu1 }
 0x104   : > { %v615_v45 = vadd.f32 %v614_v43, %v537_v42  ;;  %v687_v47 = vadd.f32 %v686_v44, %v613_v41 }
 0x105   : > { %v688_v46 = vpop.f32.mrf.mxu1 }
 0x106   : > { %v689_v48 = vadd.f32 %v688_v46, %v615_v45 }
 0x108   : > { %v693_v49 = vcombine.low %v687_v47, %v689_v48 }
 0x10a   : > { %695 = vst [vmem:[%s204_s7] sm:$0xff] %v693_v49 }
 0x10b   : > { %921 = shalt.err (!%p918_p3)
}
 0x10c   : > { %s922_s28 = scalar_lea.hbm %s711_s11, 128  ;;  %s926_s30 = scalar_lea.hbm %s1161_s3, 256 }
 0x10d   : > { %p923_p5 = scmp.ne.s32.totalorder %s711_s11, %s922_s28  ;;  %p927_p10 = scmp.lt.s32.totalorder %s711_s11, %s1161_s3 }
 0x10e   : > { %p928_p4 = scmp.lt.s32.totalorder %s926_s30, %s922_s28 }
 0x10f   : > { %p924_p6 = pnand %p923_p5, %p1065_p9 }
 0x110   : > { %p929_p13 = por %p928_p4, %p927_p10 }
 0x111   : > { %p925_p7 = pneg %p924_p6 }
 0x113   : > { %p930_p8 = pnand %p929_p13, %p925_p7 }
 0x115   : > { %933 = shalt.err (!%p930_p8)
}
 0x116   : > { %816 = dma.vmem_to_hbm [thread:$0]  (%p1065_p9), %s714_s8, 128, %s711_s11, %s697_s18  }
 0x117 PF: > { %s725_s6 = sand.u32 1, %s968_s12   ;;  %p1167_p11 = scmp.ne.s32.totalorder %s1165_s27, 0 }
 0x118   : > { %p1168_p12 = scmp.ge.s32.totalorder %s988_s17, 2  ;;  %s726_s24 = scalar_lea.sflag [#allocation4], %s725_s6 }
 0x11a   : > { %p823_p0 = pnand %p1168_p12, %p1167_p11 }
 0x11c   : > { %p824_p1 = pneg %p823_p0 }
 0x11e   : > { %963 = dma.done.wait (%p824_p1), %s726_s24, 128  }
 0x11f   : > { %965 = vsyncadd (%p824_p1), %s726_s24, 4294967168  ;;  %s19_s17 = sadd.s32 1, %s988_s17   ;;  %s1169_s12 = smov %s972_s13 }
 0x120   : > { %p16_p2 = scmp.ge.s32.totalorder %s19_s17, 4   ;;  %s1170_s13 = smov %s976_s14 }
 0x121   : > { %s1171_s14 = smov %s1070_s26  ;;  %s1172_s15 = smov %s984_s16 }
 0x122   : > { %s1173_s16 = smov %s1175_s20  ;;  %18 = sbr.rel (!%p16_p2) target bundleno = 6 (0x6), region = 77 }
 0x127   :  { %731 = vsyncpa [#allocation3], 1 }
 0x128   :  { %733 = vsyncpa [#allocation3 + $0x1], 1 }
 0x129   :  { %734 = vsyncpa [#allocation4], 1 }
 0x12a   :  { %736 = vsyncpa [#allocation4 + $0x1], 1 }

</bundles_post_ra>
